<compile_context>
chip_gen: v5e
topology: v5e:2x2
jax: 0.10.0
libtpu: 0.0.40
codegen_flags: <defaults>
</compile_context>

<pallas_src>
import jax
import jax.numpy as jnp
from jax.experimental import pallas as pl
from jax.experimental.pallas import tpu as pltpu


# ----------------------------------------------------------------------------
# Tiling helpers
# ----------------------------------------------------------------------------
def _round_up(n, m):
    return ((n + m - 1) // m) * m


def _pick_tile(n, target, align):
    """Largest multiple of `align` that divides n and is <= min(target, n);
    falls back to the full dimension (always a legal block size)."""
    t = min(target, n)
    t -= t % align
    while t >= align:
        if n % t == 0:
            return t
        t -= align
    return n


# ----------------------------------------------------------------------------
# Fused GraphConv step kernel (h and h2 branches together, optional MLP head).
# ----------------------------------------------------------------------------
def make_step_kernel(*, tile_k, h_dim, xcat_resident, has_res, fuse_mlp):
    """One propagation step.

    Refs (per grid point (i, k)):
      adj  : (tile_n, tile_k) int8    {0,1} adjacency tile (exact)
      xcat : bf16 feature slab [h|h2], D^-1/2 pre-scaled (resident or K-tiled)
      dis  : (tile_n, 1) f32          D^-1/2 for this row tile
      wcat : (fcat, 2H) bf16          block-diagonal [Wh 0; 0 Wf]
      bcat : (1, 2H) f32              [b_h | b_h2 (+ residual const folded)]
      [res]: (tile_n, 2H) f32         [residual * in_feat | 0]
      [mlp]: w1 (2H,H) bf16, b1 (1,H) f32, w2 (H,H) bf16, b2 (1,H) f32
      out  : (tile_n, 2H) bf16 (non-final, pre-scaled for next step)
             or (tile_n, H) f32 (final, MLP output)
      acc  : (tile_n, fcat) f32 scratch accumulator
    """

    def kernel(*refs):
        it = iter(refs)
        adj_ref = next(it)
        xcat_ref = next(it)
        dis_ref = next(it)
        wcat_ref = next(it)
        bcat_ref = next(it)
        res_ref = next(it) if has_res else None
        if fuse_mlp:
            w1_ref, b1_ref, w2_ref, b2_ref = (next(it) for _ in range(4))
        o_ref = next(it)
        acc_ref = next(it)

        k = pl.program_id(1)

        @pl.when(k == 0)
        def _init():
            acc_ref[...] = jnp.zeros_like(acc_ref)

        # O(N^2) aggregation: exact int8 {0,1} adjacency streamed from HBM,
        # upcast in-kernel (VPU work hidden under DMA slack) and fed to the MXU
        # as bf16 with f32 accumulation.  One matmul covers BOTH branches.
        adj_bf = adj_ref[...].astype(jnp.float32).astype(jnp.bfloat16)
        if xcat_resident:
            start = pl.multiple_of(k * tile_k, tile_k)
            x_blk = xcat_ref[pl.ds(start, tile_k), :]
        else:
            x_blk = xcat_ref[...]
        acc_ref[...] += jnp.dot(adj_bf, x_blk, preferred_element_type=jnp.float32)

        @pl.when(k == pl.num_programs(1) - 1)
        def _finalize():
            # Left D^-1/2 row scale completes A_hat (columns were pre-scaled).
            agg = (acc_ref[...] * dis_ref[...]).astype(jnp.bfloat16)
            # Block-diagonal weight -> [h | h2] already concatenated.
            slab = jnp.dot(agg, wcat_ref[...], preferred_element_type=jnp.float32)
            slab = slab + bcat_ref[...]
            if has_res:
                slab = slab + res_ref[...]
            # ReLU applies only to the h2 half: lane-aligned masked select
            # (no <128-lane column slices, no concat).
            cols = jax.lax.broadcasted_iota(jnp.int32, slab.shape, 1)
            slab = jnp.where(cols >= h_dim, jnp.maximum(slab, 0.0), slab)

            if fuse_mlp:
                # MLP head: Linear(2H->H, BN folded) -> ReLU -> Linear(H->H).
                # TODO(synk): Dropout(p) is inference-mode identity; training
                # would need RNG masking + batch statistics.
                z = jnp.dot(slab.astype(jnp.bfloat16), w1_ref[...],
                            preferred_element_type=jnp.float32) + b1_ref[...]
                z = jnp.maximum(z, 0.0)
                out = jnp.dot(z.astype(jnp.bfloat16), w2_ref[...],
                              preferred_element_type=jnp.float32) + b2_ref[...]
                o_ref[...] = out.astype(o_ref.dtype)
            else:
                # Pre-apply the next step's right D^-1/2 so the next aggregation
                # consumes a pre-scaled slab; carried in bf16 (halves the
                # inter-step HBM writeback / re-read).
                o_ref[...] = (slab * dis_ref[...]).astype(o_ref.dtype)

    return kernel


def gcn_step(adj_i8, xcat, dis_col, wcat, bcat, *, h_dim, res2h=None, mlp=None):
    n_pad = adj_i8.shape[0]
    fcat = xcat.shape[1]
    two_h = wcat.shape[1]
    fuse_mlp = mlp is not None
    has_res = res2h is not None
    out_cols = h_dim if fuse_mlp else two_h
    out_dtype = jnp.float32 if fuse_mlp else jnp.bfloat16

    # Per-generation VMEM budget (v7x: 64 MiB physical; v5e/v6e: 128 MiB).
    try:
        info = pltpu.get_tpu_info()
        vmem_cap = int(getattr(info, "vmem_capacity_bytes", 64 * 1024 * 1024))
    except Exception:  # conservative fallback = v7x
        vmem_cap = 64 * 1024 * 1024
    vmem_budget = int(0.7 * vmem_cap)

    # Row (M) tile: large, multiple of 32 (native int8 sublane tiling), and at
    # least two row tiles so both v7x TensorCores get work on the parallel axis.
    tile_n = _pick_tile(n_pad, 1024, 32)
    while n_pad // tile_n < 2:
        half = tile_n // 2
        if half >= 32 and half % 32 == 0 and n_pad % half == 0:
            tile_n = half
        else:
            break

    # Keep the full feature slab resident in VMEM when it fits (DMA'd once,
    # instead of once per row tile); otherwise fall back to K-streaming it.
    xcat_bytes = 2 * n_pad * fcat * 2  # bf16, allow for a double-buffered copy
    xcat_resident = xcat_bytes <= min(16 * 1024 * 1024, vmem_budget // 3)

    def footprint(tk):
        fp = 2 * tile_n * tk * 1                                  # int8 adj x2 bufs
        fp += xcat_bytes if xcat_resident else 2 * tk * fcat * 2  # feature slab
        fp += 2 * tile_n * out_cols * (4 if fuse_mlp else 2)      # output x2 bufs
        fp += tile_n * fcat * 4                                   # f32 accumulator
        fp += 2 * tile_n * 4                                      # D^-1/2 rows
        if has_res:
            fp += 2 * tile_n * two_h * 4                          # residual slab
        fp += 2 * (fcat * two_h * 2 + two_h * 4)                  # Wcat, bcat
        if fuse_mlp:
            fp += 2 * (two_h * h_dim * 2 + h_dim * 4
                       + h_dim * h_dim * 2 + h_dim * 4)
        return fp

    # Contraction (K) tile over the node axis: as large as the budget allows.
    tile_k = _pick_tile(n_pad, 2048, 128)
    while footprint(tile_k) > vmem_budget and tile_k > 128:
        tile_k = _pick_tile(n_pad, tile_k // 2, 128)

    grid = (n_pad // tile_n, n_pad // tile_k)

    if xcat_resident:
        xcat_spec = pl.BlockSpec((n_pad, fcat), lambda i, k: (0, 0))
    else:
        xcat_spec = pl.BlockSpec((tile_k, fcat), lambda i, k: (k, 0))

    in_specs = [
        pl.BlockSpec((tile_n, tile_k), lambda i, k: (i, k)),   # adjacency (int8)
        xcat_spec,                                             # [h | h2] slab (bf16)
        pl.BlockSpec((tile_n, 1), lambda i, k: (i, 0)),        # D^-1/2 rows
        pl.BlockSpec((fcat, two_h), lambda i, k: (0, 0)),      # block-diag weight
        pl.BlockSpec((1, two_h), lambda i, k: (0, 0)),         # fused bias
    ]
    args = [adj_i8, xcat, dis_col, wcat, bcat]
    if has_res:
        in_specs.append(pl.BlockSpec((tile_n, two_h), lambda i, k: (i, 0)))
        args.append(res2h)
    if fuse_mlp:
        w1, b1, w2, b2 = mlp
        in_specs += [
            pl.BlockSpec((two_h, h_dim), lambda i, k: (0, 0)),  # W1 (BN folded)
            pl.BlockSpec((1, h_dim), lambda i, k: (0, 0)),      # b1 (BN folded)
            pl.BlockSpec((h_dim, h_dim), lambda i, k: (0, 0)),  # W2
            pl.BlockSpec((1, h_dim), lambda i, k: (0, 0)),      # b2
        ]
        args += [w1, b1, w2, b2]

    kernel = make_step_kernel(tile_k=tile_k, h_dim=h_dim,
                              xcat_resident=xcat_resident,
                              has_res=has_res, fuse_mlp=fuse_mlp)

    return pl.pallas_call(
        kernel,
        out_shape=jax.ShapeDtypeStruct((n_pad, out_cols), out_dtype),
        grid_spec=pltpu.PrefetchScalarGridSpec(
            num_scalar_prefetch=0,
            grid=grid,
            in_specs=in_specs,
            out_specs=pl.BlockSpec((tile_n, out_cols), lambda i, k: (i, 0)),
            scratch_shapes=[pltpu.VMEM((tile_n, fcat), jnp.float32)],
        ),
        compiler_params=pltpu.CompilerParams(
            dimension_semantics=("parallel", "arbitrary"),
            vmem_limit_bytes=vmem_budget),
    )(*args)


# ----------------------------------------------------------------------------
# Host-side param prep + full forward (glue in JAX, hot path in Pallas).
# ----------------------------------------------------------------------------
def fold_batchnorm(w, b, gamma, beta, mean, var, eps=1e-5):
    """Fold BatchNorm1d (eval mode, running stats) into the preceding Linear."""
    scale = gamma * jax.lax.rsqrt(var + eps)
    return w * scale[None, :], (b - mean) * scale + beta


def gcn_with_feature_forward(a_binary, in_feat, in_feat2, params, *,
                             prop_step=2, residual=0.0, bn_eps=1e-5):
    f32, bf16 = jnp.float32, jnp.bfloat16
    n = a_binary.shape[0]
    h_dim = params["w_conv1"].shape[0]
    row = lambda v: v.reshape(1, -1).astype(f32)

    # Symmetric normalization with DGL's degree clamp; A stays exact int8 in
    # HBM, D^-1/2 is folded into feature columns (pre-scale) + output rows.
    deg = jnp.maximum(a_binary.astype(f32).sum(axis=1), 1.0)
    dis = deg ** -0.5

    # Pad N so tiles stay (sublane, lane)-aligned even for awkward N; padded
    # nodes are isolated (zero adjacency, zero D^-1/2) and sliced off at the end.
    pad_align = 512 if n >= 4096 else (128 if n >= 128 else 8)
    n_pad = _round_up(n, pad_align)
    pad = n_pad - n

    adj_i8 = jnp.pad(a_binary.astype(jnp.int8), ((0, pad), (0, pad)))
    dis_col = jnp.pad(dis, (0, pad)).reshape(-1, 1).astype(f32)
    x1 = jnp.pad(in_feat.astype(f32), ((0, pad), (0, 0)))
    x2 = jnp.pad(in_feat2.astype(f32), ((0, pad), (0, 0)))

    # MLP head with BatchNorm (eval) folded into the first Linear.
    w1bn, b1bn = fold_batchnorm(params["w_mlp1"], params["b_mlp1"],
                                params["bn_gamma"], params["bn_beta"],
                                params["bn_mean"], params["bn_var"], eps=bn_eps)
    mlp = (w1bn.astype(bf16), row(b1bn),
           params["w_mlp2"].astype(bf16), row(params["b_mlp2"]))

    # Residual term [residual * in_feat | 0] (only if residual != 0).
    res2h = None
    if residual != 0.0:
        res2h = jnp.concatenate(
            [float(residual) * x1, jnp.zeros((n_pad, h_dim), f32)], axis=1)

    # Fused [h | h2] slab in bf16, pre-scaled by D^-1/2 (right factor of A_hat).
    xcat = (dis_col * jnp.concatenate([x1, x2], axis=1)).astype(bf16)

    for step in range(prop_step):
        first = step == 0
        last = step == prop_step - 1
        wh = params["w_conv1"] if first else params["w_conv2"]
        bh = params["b_conv1"] if first else params["b_conv2"]
        wf = params["w_conv1f"] if first else params["w_conv2f"]
        bf_ = params["b_conv1f"] if first else params["b_conv2f"]
        add_const = 0.0 if first else float(residual)  # "+ residual" on h2 only

        # Block-diagonal combined GraphConv weight: one matmul -> [h | h2].
        f1, f2 = wh.shape[0], wf.shape[0]
        wcat = (jnp.zeros((f1 + f2, 2 * h_dim), f32)
                .at[:f1, :h_dim].set(wh)
                .at[f1:, h_dim:].set(wf)).astype(bf16)
        bcat = jnp.concatenate([bh, bf_ + add_const]).reshape(1, -1).astype(f32)

        xcat = gcn_step(adj_i8, xcat, dis_col, wcat, bcat,
                        h_dim=h_dim, res2h=res2h,
                        mlp=mlp if last else None)
    return xcat[:n]


# ----------------------------------------------------------------------------
# Pure-JAX reference (f32) for a correctness sanity check.
# ----------------------------------------------------------------------------
def _reference_forward(a_binary, x, x2, params, prop_step, residual, eps=1e-5):
    deg = jnp.maximum(a_binary.sum(axis=1), 1.0)
    dis = deg ** -0.5
    adj = dis[:, None] * a_binary * dis[None, :]
    h = adj @ x @ params["w_conv1"] + params["b_conv1"] + residual * x
    h2 = jax.nn.relu(adj @ x2 @ params["w_conv1f"] + params["b_conv1f"])
    for _ in range(1, prop_step):
        h = adj @ h @ params["w_conv2"] + params["b_conv2"] + residual * x
        h2 = jax.nn.relu(adj @ h2 @ params["w_conv2f"] + params["b_conv2f"]
                         + residual)
    z = jnp.concatenate([h, h2], axis=1) @ params["w_mlp1"] + params["b_mlp1"]
    z = ((z - params["bn_mean"])
         * (params["bn_gamma"] * jax.lax.rsqrt(params["bn_var"] + eps))
         + params["bn_beta"])
    z = jax.nn.relu(z)
    return z @ params["w_mlp2"] + params["b_mlp2"]


if __name__ == "__main__":
    N, in_feats, h_feats = 64, 16, 32
    prop_step, residual = 2, 0.5

    key = jax.random.PRNGKey(0)
    keys = jax.random.split(key, 20)

    # Deterministic random undirected graph, binary adjacency, no self loops.
    a = (jax.random.uniform(keys[0], (N, N)) < 0.1).astype(jnp.float32)
    a = jnp.maximum(a, a.T)
    a = a * (1.0 - jnp.eye(N, dtype=jnp.float32))

    # Node features (in_feat has h_feats channels, matching GraphConv(h_feats, h_feats)).
    in_feat = jax.random.normal(keys[1], (N, h_feats), jnp.float32)
    in_feat2 = jax.random.normal(keys[2], (N, in_feats), jnp.float32)

    s = 0.1  # deterministic small-scale init
    params = {
        "w_conv1":  s * jax.random.normal(keys[3], (h_feats, h_feats), jnp.float32),
        "b_conv1":  s * jax.random.normal(keys[4], (h_feats,), jnp.float32),
        "w_conv2":  s * jax.random.normal(keys[5], (h_feats, h_feats), jnp.float32),
        "b_conv2":  s * jax.random.normal(keys[6], (h_feats,), jnp.float32),
        "w_conv1f": s * jax.random.normal(keys[7], (in_feats, h_feats), jnp.float32),
        "b_conv1f": s * jax.random.normal(keys[8], (h_feats,), jnp.float32),
        "w_conv2f": s * jax.random.normal(keys[9], (h_feats, h_feats), jnp.float32),
        "b_conv2f": s * jax.random.normal(keys[10], (h_feats,), jnp.float32),
        "w_mlp1":   s * jax.random.normal(keys[11], (2 * h_feats, h_feats), jnp.float32),
        "b_mlp1":   s * jax.random.normal(keys[12], (h_feats,), jnp.float32),
        "bn_gamma": 1.0 + 0.1 * jax.random.normal(keys[13], (h_feats,), jnp.float32),
        "bn_beta":  0.1 * jax.random.normal(keys[14], (h_feats,), jnp.float32),
        "bn_mean":  0.1 * jax.random.normal(keys[15], (h_feats,), jnp.float32),
        "bn_var":   1.0 + 0.1 * jax.random.uniform(keys[16], (h_feats,), jnp.float32),
        "w_mlp2":   s * jax.random.normal(keys[17], (h_feats, h_feats), jnp.float32),
        "b_mlp2":   s * jax.random.normal(keys[18], (h_feats,), jnp.float32),
    }

    out = gcn_with_feature_forward(a, in_feat, in_feat2, params,
                                   prop_step=prop_step, residual=residual)
    out = jax.block_until_ready(out)
    assert out.shape == (N, h_feats) and out.dtype == jnp.float32

    ref = jax.block_until_ready(
        _reference_forward(a, in_feat, in_feat2, params, prop_step, residual))
    max_err = float(jnp.max(jnp.abs(out - ref)))
    # Adjacency + normalization are exact; remaining error is bf16 feature/weight
    # rounding with f32 MXU accumulation.
    assert jnp.allclose(out, ref, atol=5e-2, rtol=5e-2), max_err
    print("KERNEL_OK")
</pallas_src>

<mosaic_0001>
module attributes {stable_mosaic.version = 11 : i64} {
  func.func @kernel(%arg0: i32, %arg1: i32, %arg2: memref<32x64xi8, #tpu.memory_space<vmem>>, %arg3: memref<64x48xbf16, #tpu.memory_space<vmem>>, %arg4: memref<32x1xf32, #tpu.memory_space<vmem>>, %arg5: memref<48x64xbf16, #tpu.memory_space<vmem>>, %arg6: memref<1x64xf32, #tpu.memory_space<vmem>>, %arg7: memref<32x64xf32, #tpu.memory_space<vmem>>, %arg8: memref<32x64xbf16, #tpu.memory_space<vmem>>, %arg9: memref<32x48xf32, #tpu.memory_space<vmem>>) attributes {dimension_semantics = [#tpu.dimension_semantics<parallel>, #tpu.dimension_semantics<arbitrary>], iteration_bounds = array<i64: 2, 1>, scalar_prefetch = 0 : i64, scratch_operands = 1 : i64, tpu.core_type = #tpu.core_type<tc>, window_params = [{transform_indices = @transform_0, window_bounds = array<i64: 32, 64>}, {pipeline_mode = #tpu.pipeline_mode<synchronous>, transform_indices = @transform_1, window_bounds = array<i64: 64, 48>}, {transform_indices = @transform_2, window_bounds = array<i64: 32, 1>}, {pipeline_mode = #tpu.pipeline_mode<synchronous>, transform_indices = @transform_3, window_bounds = array<i64: 48, 64>}, {pipeline_mode = #tpu.pipeline_mode<synchronous>, transform_indices = @transform_4, window_bounds = array<i64: 1, 64>}, {transform_indices = @transform_5, window_bounds = array<i64: 32, 64>}, {transform_indices = @transform_6, window_bounds = array<i64: 32, 64>}]} {
    %c0_i32 = arith.constant 0 : i32
    %0 = arith.cmpi eq, %arg1, %c0_i32 : i32
    %1 = arith.extui %0 : i1 to i32
    %c0_i32_0 = arith.constant 0 : i32
    %2 = arith.cmpi ne, %1, %c0_i32_0 : i32
    scf.if %2 {
      %cst_9 = arith.constant 0.000000e+00 : f32
      %17 = vector.broadcast %cst_9 : f32 to vector<32x48xf32>
      %c0_10 = arith.constant 0 : index
      %c0_11 = arith.constant 0 : index
      %18 = vector.load %arg9[%c0_10, %c0_11] : memref<32x48xf32, #tpu.memory_space<vmem>>, vector<32x48xf32>
      tpu.vector_store %arg9[%c0_10, %c0_11], %17 {strides = array<i32>} : memref<32x48xf32, #tpu.memory_space<vmem>>, vector<32x48xf32>,
    } else {
    }
    %c0 = arith.constant 0 : index
    %c0_1 = arith.constant 0 : index
    %3 = vector.load %arg2[%c0, %c0_1] : memref<32x64xi8, #tpu.memory_space<vmem>>, vector<32x64xi8>
    %4 = arith.sitofp %3 : vector<32x64xi8> to vector<32x64xf32>
    %5 = arith.truncf %4 : vector<32x64xf32> to vector<32x64xbf16>
    %c64_i32 = arith.constant 64 : i32
    %6 = arith.muli %arg1, %c64_i32 : i32
    %7 = tpu.assume_multiple %6, 64 : i32
    %8 = arith.index_cast %7 : i32 to index
    %c0_2 = arith.constant 0 : index
    %9 = vector.load %arg3[%8, %c0_2] : memref<64x48xbf16, #tpu.memory_space<vmem>>, vector<64x48xbf16>
    %c0_3 = arith.constant 0 : index
    %c0_4 = arith.constant 0 : index
    %10 = vector.load %arg9[%c0_3, %c0_4] : memref<32x48xf32, #tpu.memory_space<vmem>>, vector<32x48xf32>
    %cst = arith.constant dense<0.000000e+00> : vector<32x48xf32>
    %11 = tpu.matmul %5, %9, %cst {dimension_numbers = #tpu.dot_dimension_numbers<[1], [0], [0], [1], [0, 0, 1, 1], [], []>} : vector<32x64xbf16>, vector<64x48xbf16>, vector<32x48xf32> -> vector<32x48xf32>
    %12 = arith.addf %10, %11 : vector<32x48xf32>
    %c0_5 = arith.constant 0 : index
    %c0_6 = arith.constant 0 : index
    %13 = vector.load %arg9[%c0_5, %c0_6] : memref<32x48xf32, #tpu.memory_space<vmem>>, vector<32x48xf32>
    tpu.vector_store %arg9[%c0_5, %c0_6], %12 {strides = array<i32>} : memref<32x48xf32, #tpu.memory_space<vmem>>, vector<32x48xf32>,
    %c0_i32_7 = arith.constant 0 : i32
    %14 = arith.cmpi eq, %arg1, %c0_i32_7 : i32
    %15 = arith.extui %14 : i1 to i32
    %c0_i32_8 = arith.constant 0 : i32
    %16 = arith.cmpi ne, %15, %c0_i32_8 : i32
    scf.if %16 {
      %c0_9 = arith.constant 0 : index
      %c0_10 = arith.constant 0 : index
      %17 = vector.load %arg9[%c0_9, %c0_10] : memref<32x48xf32, #tpu.memory_space<vmem>>, vector<32x48xf32>
      %c0_11 = arith.constant 0 : index
      %c0_12 = arith.constant 0 : index
      %18 = vector.load %arg4[%c0_11, %c0_12] : memref<32x1xf32, #tpu.memory_space<vmem>>, vector<32x1xf32>
      %19 = vector.broadcast %18 : vector<32x1xf32> to vector<32x48xf32>
      %20 = arith.mulf %17, %19 : vector<32x48xf32>
      %21 = arith.truncf %20 : vector<32x48xf32> to vector<32x48xbf16>
      %c0_13 = arith.constant 0 : index
      %c0_14 = arith.constant 0 : index
      %22 = vector.load %arg5[%c0_13, %c0_14] : memref<48x64xbf16, #tpu.memory_space<vmem>>, vector<48x64xbf16>
      %cst_15 = arith.constant dense<0.000000e+00> : vector<32x64xf32>
      %23 = tpu.matmul %21, %22, %cst_15 {dimension_numbers = #tpu.dot_dimension_numbers<[1], [0], [0], [1], [0, 0, 1, 1], [], []>} : vector<32x48xbf16>, vector<48x64xbf16>, vector<32x64xf32> -> vector<32x64xf32>
      %c0_16 = arith.constant 0 : index
      %c0_17 = arith.constant 0 : index
      %24 = vector.load %arg6[%c0_16, %c0_17] : memref<1x64xf32, #tpu.memory_space<vmem>>, vector<1x64xf32>
      %25 = vector.broadcast %24 : vector<1x64xf32> to vector<32x64xf32>
      %26 = arith.addf %23, %25 : vector<32x64xf32>
      %c0_18 = arith.constant 0 : index
      %c0_19 = arith.constant 0 : index
      %27 = vector.load %arg7[%c0_18, %c0_19] : memref<32x64xf32, #tpu.memory_space<vmem>>, vector<32x64xf32>
      %28 = arith.addf %26, %27 : vector<32x64xf32>
      %29 = tpu.iota {dimensions = array<i32: 1>} : vector<32x64xi32>
      %c32_i32 = arith.constant 32 : i32
      %30 = vector.broadcast %c32_i32 : i32 to vector<32x64xi32>
      %31 = arith.cmpi sge, %29, %30 : vector<32x64xi32>
      %cst_20 = arith.constant 0.000000e+00 : f32
      %32 = vector.broadcast %cst_20 : f32 to vector<32x64xf32>
      %33 = arith.maximumf %28, %32 : vector<32x64xf32>
      %34 = arith.select %31, %33, %28 : vector<32x64xi1>, vector<32x64xf32>
      %c0_21 = arith.constant 0 : index
      %c0_22 = arith.constant 0 : index
      %35 = vector.load %arg4[%c0_21, %c0_22] : memref<32x1xf32, #tpu.memory_space<vmem>>, vector<32x1xf32>
      %36 = vector.broadcast %35 : vector<32x1xf32> to vector<32x64xf32>
      %37 = arith.mulf %34, %36 : vector<32x64xf32>
      %38 = arith.truncf %37 : vector<32x64xf32> to vector<32x64xbf16>
      %c0_23 = arith.constant 0 : index
      %c0_24 = arith.constant 0 : index
      %39 = vector.load %arg8[%c0_23, %c0_24] : memref<32x64xbf16, #tpu.memory_space<vmem>>, vector<32x64xbf16>
      tpu.vector_store %arg8[%c0_23, %c0_24], %38 {strides = array<i32>} : memref<32x64xbf16, #tpu.memory_space<vmem>>, vector<32x64xbf16>,
    } else {
    }
    return
  }
  func.func @transform_0(%arg0: i32, %arg1: i32) -> (i32, i32) {
    %c0_i32 = arith.constant 0 : i32
    return %arg0, %arg1 : i32, i32
  }
  func.func @transform_1(%arg0: i32, %arg1: i32) -> (i32, i32) {
    %c0_i32 = arith.constant 0 : i32
    %c0_i32_0 = arith.constant 0 : i32
    %c0_i32_1 = arith.constant 0 : i32
    return %c0_i32, %c0_i32_0 : i32, i32
  }
  func.func @transform_2(%arg0: i32, %arg1: i32) -> (i32, i32) {
    %c0_i32 = arith.constant 0 : i32
    %c0_i32_0 = arith.constant 0 : i32
    return %arg0, %c0_i32 : i32, i32
  }
  func.func @transform_3(%arg0: i32, %arg1: i32) -> (i32, i32) {
    %c0_i32 = arith.constant 0 : i32
    %c0_i32_0 = arith.constant 0 : i32
    %c0_i32_1 = arith.constant 0 : i32
    return %c0_i32, %c0_i32_0 : i32, i32
  }
  func.func @transform_4(%arg0: i32, %arg1: i32) -> (i32, i32) {
    %c0_i32 = arith.constant 0 : i32
    %c0_i32_0 = arith.constant 0 : i32
    %c0_i32_1 = arith.constant 0 : i32
    return %c0_i32, %c0_i32_0 : i32, i32
  }
  func.func @transform_5(%arg0: i32, %arg1: i32) -> (i32, i32) {
    %c0_i32 = arith.constant 0 : i32
    %c0_i32_0 = arith.constant 0 : i32
    return %arg0, %c0_i32 : i32, i32
  }
  func.func @transform_6(%arg0: i32, %arg1: i32) -> (i32, i32) {
    %c0_i32 = arith.constant 0 : i32
    %c0_i32_0 = arith.constant 0 : i32
    return %arg0, %c0_i32 : i32, i32
  }
}

</mosaic_0001>

<bundles_post_ra>
// kernel: tpu_custom_call.1
= control target key start
LH: loop header
LB: loop body
LE: loop exit
PB: predicated region body
PF: predicated region fallthrough
CT: control target
= control target key end

     0   :  { %11 = vsyncpa [#allocation4], 0  ;;  %s1056_s0 = inlined_call_operand.vmem [shape: s8[64,64], index: 0, kind: input, shape index: {}]   ;;  %s1057_s1 = inlined_call_operand.vmem [shape: bf16[64,48], index: 1, kind: input, shape index: {}]   ;;  %s1058_s2 = inlined_call_operand.vmem [shape: f32[64,1], index: 2, kind: input, shape index: {}]   ;;  %s1059_s3 = inlined_call_operand.vmem [shape: bf16[48,64], index: 3, kind: input, shape index: {}]   ;;  %s1060_s4 = inlined_call_operand.vmem [shape: f32[1,64], index: 4, kind: input, shape index: {}]   ;;  %s1061_s5 = inlined_call_operand.vmem [shape: f32[64,64], index: 5, kind: input, shape index: {}]   ;;  %s1062_s6 = inlined_call_operand.hbm [shape: bf16[64,64], index: 6, kind: output, shape index: {}]  }
   0x1   :  { %13 = vsyncpa [#allocation4 + $0x1], 0  ;;  %s893_s21 = smov 0   ;;  %s895_s22 = smov 0  }
   0x2   :  { %s897_s23 = smov 0   ;;  %s899_s24 = smov 0  }
   0x3   :  { %s901_s25 = smov 0   ;;  %s903_s26 = smov 0  }
   0x4 LB: > { %s649_s27 = sadd.s32 4294967295, %s852_s26   ;;  %s650_s28 = sadd.s32 4294967294, %s852_s26   ;;  %s852_s26 = sphi %s903_s26, %s19_s26   ;;  %s848_s25 = sphi %s901_s25, %s1069_s25   ;;  %s844_s24 = sphi %s899_s24, %s1068_s24   ;;  %s840_s23 = sphi %s897_s23, %s1067_s23   ;;  %s836_s22 = sphi %s895_s22, %s1066_s22   ;;  %s832_s21 = sphi %s893_s21, %s1065_s21  }
   0x5   : > { %s31_s29 = sadd.s32 1, %s848_s25  ;;  %s181_s30 = sadd.s32 1, %s840_s23 }
   0x6   : > { %p33_p0 = scmp.ge.s32.totalorder %s31_s29, 2  ;;  %p191_p1 = scmp.ne.s32.totalorder %s840_s23, %s836_s22 }
   0x7   : > { %p192_p2 = scmp.eq.s32.totalorder %s649_s27, 1  ;;  %p197_p3 = scmp.ne.s32.totalorder %s836_s22, %s832_s21 }
   0x8   : > { %s1071_s29 = smov (%p33_p0, %s31_s29), 0  ;;  %p198_p5 = scmp.eq.s32.totalorder %s650_s28, 1 }
   0x9   : > { %p933_p4 = por %p192_p2, %p191_p1  ;;  %s178_s8 = ssub.s32 %s848_s25, %s1071_s29 }
   0xa   : > { %p653_p6 = scmp.ge.s32.totalorder %s852_s26, 1  ;;  %p179_p7 = scmp.eq.s32.totalorder %s178_s8, 0 }
   0xb   : > { %p940_p8 = por %p198_p5, %p197_p3  ;;  %p253_p9 = scmp.lt.s32.totalorder %s852_s26, 3 }
   0xc   : > { %s946_s10 = scalar_select %p179_p7, %s840_s23, %s181_s30  }
   0xd   : > { %p254_p10 = pnand %p653_p6, %p253_p9 }
   0xe   : > { %p295_p11 = scmp.lt.s32.totalorder (!%p254_p10), %s844_s24, 1  ;;  %s656_s13 = sshll.u32 (!%p254_p10), %s844_s24, 2 }
   0xf   : > { %257 = sbr.rel (%p254_p10) target bundleno = 346 (0x15a), region = 44  ;;  %p303_p12 = scmp.lt.s32.totalorder (!%p254_p10), %s656_s13, 7 }
  0x10   : > { %s292_s15 = sand.u32 (!%p254_p10), 1, %s836_s22   ;;  %s794_s14 = scalar_lea.hbm (!%p254_p10), %s1062_s6, 32 }
  0x14   : > { %v700_v0 = vld [vmem:[%s1057_s1 + $0x18] sm:$0xff]  ;;  %v854_v1 = vmov 0   ;;  %vm320_vm0 = vcmask 392192   ;;  %v699_v2 = vld [vmem:[%s1057_s1 + $0x10] sm:$0xff]  ;;  %s296_s16 = scalar_select %p295_p11, %s844_s24, 1  ;;  %v855_v3 = vmov 0.0   ;;  %v510_v50 = vlaneseq }
  0x15   : > { %771 = vset.pattern.permute.xlu0 %v854_v1  ;;  %772 = vset.pattern.permute.xlu1 %v854_v1  ;;  %321 = vst.msk [vmem:[#allocation2] sm:$0xff] %vm320_vm0, %v855_v3  ;;  %v698_v4 = vld [vmem:[%s1057_s1 + $0x8] sm:$0xff]  ;;  %s1073_s13 = smov (!%p303_p12, %s656_s13), 7  ;;  %v697_v14 = vld [vmem:[%s1057_s1] sm:$0xff]  ;;  %vm377_vm1 = vcmask 523264   ;;  %v703_v21 = vld [vmem:[%s1059_s3 + $0x10] sm:$0xff] }
  0x16   : > { %388 = vmatpush.bf16.msra.mxu0 %v700_v0  ;;  %705 = vmatpush.bf16.msra.mxu2 %v700_v0  ;;  %322 = vst.msk [vmem:[#allocation2 + $0x8] sm:$0xff] %vm320_vm0, %v855_v3  ;;  %s655_s17 = sshll.u32 %s296_s16, 3  ;;  %s657_s30 = sshll.u32 %s1073_s13, 3  ;;  %v702_v22 = vld [vmem:[%s1059_s3 + $0x8] sm:$0xff]  ;;  %v701_v23 = vld [vmem:[%s1059_s3] sm:$0xff]  ;;  %v511_v54 = vand.u32 127, %v510_v50 }
  0x17   : > { %323 = vst.msk [vmem:[#allocation2 + $0x10] sm:$0xff] %vm320_vm0, %v855_v3  ;;  %s301_s20 = scalar_lea.vmem %s1056_s0, %s655_s17  ;;  %s306_s12 = scalar_lea.vmem %s1058_s2, %s657_s30  ;;  %488 = vmatpush.bf16.msra.mxu1 %v703_v21  ;;  %709 = vmatpush.bf16.msra.mxu3 %v703_v21  ;;  %v773_v51 = vld [vmem:[%s1060_s4] ss:$0 sm:$0xff]  ;;  %vm529_vm3 = vcmask 519168  }
  0x18   : > { %324 = vst.msk [vmem:[#allocation2 + $0x18] sm:$0xff] %vm320_vm0, %v855_v3  ;;  %v325_v5 = vld [vmem:[%s301_s20] sm:$0xff]  ;;  %v421_v15 = vld [vmem:[%s306_s12 + $0x10] sm:$0xff]  ;;  %v422_v19 = vld [vmem:[%s306_s12 + $0x18] sm:$0xff]  ;;  %s998_s11 = scalar_lea.vmem %s1061_s5, %s657_s30  ;;  %vm512_vm2 = vcmp.ge.s32.totalorder %v511_v54, 32  ;;  %s654_s13 = sshll.u32 %s292_s15, 4 }
  0x19   : > { %v326_v6 = vunpack.c.0.s8 %v325_v5  ;;  %v327_v7 = vunpack.c.1.s8 %v325_v5  ;;  %v328_v8 = vunpack.c.2.s8 %v325_v5  ;;  %v329_v9 = vunpack.c.3.s8 %v325_v5  ;;  %v419_v16 = vld [vmem:[%s306_s12] sm:$0xff]  ;;  %435 = vperm.xlu0 %771, %v421_v15   ;;  %v420_v20 = vld [vmem:[%s306_s12 + $0x8] sm:$0xff]  ;;  %s294_s30 = scalar_lea.vmem [#allocation3], %s654_s13  ;;  %s704_s16 = sshll.u32 %s844_s24, 4 }
  0x1a   : > { %389 = vmatpush.bf16.msra.mxu0 %v699_v2  ;;  %706 = vmatpush.bf16.msra.mxu2 %v699_v2  ;;  %v502_v53 = vld [vmem:[%s998_s11] sm:$0xff]  ;;  %v503_v61 = vld [vmem:[%s998_s11 + $0x8] sm:$0xff]  ;;  %v504_v2 = vld [vmem:[%s998_s11 + $0x10] sm:$0xff]  ;;  %s546_s19 = scalar_lea.hbm %s1062_s6, %s704_s16  ;;  %s547_s20 = sshll.u32 %s294_s30, 4  ;;  %s548_s20 = int_to_ptr.vmem [resolvable:$true] %s547_s20 }
  0x1b   : > { %v330_v10 = vcvt.s32.f32 %v326_v6  ;;  %v331_v11 = vcvt.s32.f32 %v327_v7  ;;  %v332_v12 = vcvt.s32.f32 %v328_v8  ;;  %v333_v13 = vcvt.s32.f32 %v329_v9  ;;  %425 = vperm.xlu1 %772, %v419_v16   ;;  %489 = vmatpush.bf16.msra.mxu1 %v702_v22  ;;  %s549_s27 = sshll.u32 %s546_s19, 4  ;;  %s535_s24 = scalar_lea.sflag [#allocation4], %s292_s15  ;;  %s550_s27 = int_to_ptr.hbm [resolvable:$true] %s549_s27 }
  0x1c   : > { %710 = vmatpush.bf16.msra.mxu3 %v702_v22  ;;  %v349_v24 = vld [vmem:[#allocation2] sm:$0xff]  ;;  %s788_s28 = sshra.s32 %s550_s27, 4  ;;  %s789_s28 = int_to_ptr.hbm [resolvable:$true] %s788_s28 }
  0x1d   : > { %v334_v17 = vpack.c.bf16 %v331_v11, %v330_v10  ;;  %v335_v18 = vpack.c.bf16 %v333_v13, %v332_v12  ;;  %v350_v29 = vld [vmem:[#allocation2 + $0x8] sm:$0xff]  ;;  %v505_v13 = vld [vmem:[%s998_s11 + $0x18] sm:$0xff]  ;;  %s790_s8 = scalar_lea.hbm %s789_s28, 16  ;;  %p795_p2 = scmp.lt.s32.totalorder %s789_s28, %s1062_s6 }
  0x1e   : > { %390 = vmatpush.bf16.msra.mxu0 %v698_v4  ;;  %707 = vmatpush.bf16.msra.mxu2 %v698_v4  ;;  %v351_v27 = vld [vmem:[#allocation2 + $0x10] sm:$0xff]  ;;  %p791_p13 = scmp.ne.s32.totalorder %s789_s28, %s790_s8  ;;  %p796_p3 = scmp.lt.s32.totalorder %s794_s14, %s790_s8 }
  0x1f   : > { %490 = vmatpush.bf16.msra.mxu1 %v701_v23  ;;  %v352_v34 = vld [vmem:[#allocation2 + $0x18] sm:$0xff] }
  0x20   : > { %711 = vmatpush.bf16.msra.mxu3 %v701_v23  ;;  %p792_p0 = pnand %p791_p13, %p933_p4  ;;  %p797_p5 = por %p796_p3, %p795_p2 }
  0x21   : > { %440 = vperm.xlu0 %771, %v422_v19  }
  0x22   : > { %391 = vmatpush.bf16.msra.mxu0 %v697_v14  ;;  %708 = vmatpush.bf16.msra.mxu2 %v697_v14  ;;  %p793_p1 = pneg %p792_p0 }
  0x23   : > { %430 = vperm.xlu1 %772, %v420_v20  }
  0x24   : > { %p798_p6 = pnand %p797_p5, %p793_p1 }
  0x25   : > { %676 = vmatmul.msk.bf16.vlgmr.msra.gmra.mxu0 %vm377_vm1, %v334_v17  ;;  %677 = vmatmul.msk.bf16.vlgmr.msra.gmra.mxu2 %vm377_vm1, %v335_v18 }
  0x8b   : > { %v436_v35 = vpop.permute.xlu0 %435 }
  0x8d   : > { %v426_v30 = vpop.permute.xlu1 %425 }
  0x93   : > { %v441_v45 = vpop.permute.xlu0 %440 }
  0x95   : > { %v431_v39 = vpop.permute.xlu1 %430 }
  0xa2   : > { %v393_v25 = vpop.f32.mrf.mxu0 }
  0xa3   : > { %v403_v26 = vadd.f32 %v393_v25, %v349_v24 }
  0xa5   : > { %408 = vst.msk [vmem:[#allocation2] sm:$0xff] %vm320_vm0, %v403_v26 }
  0xa8   : > { %v398_v28 = vpop.f32.mrf.mxu2 }
  0xa9   : > { %v405_v31 = vadd.f32 %v398_v28, %v351_v27 }
  0xaa   : > { %v395_v32 = vpop.f32.mrf.mxu0 }
  0xab   : > { %410 = vst.msk [vmem:[#allocation2 + $0x10] sm:$0xff] %vm320_vm0, %v405_v31  ;;  %v404_v33 = vadd.f32 %v395_v32, %v350_v29 }
  0xac   : > { %v415_v36 = vld [vmem:[#allocation2] sm:$0xff] }
  0xad   : > { %409 = vst.msk [vmem:[#allocation2 + $0x8] sm:$0xff] %vm320_vm0, %v404_v33  ;;  %v443_v40 = vmul.f32 %v426_v30, %v415_v36 }
  0xb0   : > { %v400_v37 = vpop.f32.mrf.mxu2 }
  0xb1   : > { %v406_v38 = vadd.f32 %v400_v37, %v352_v34 }
  0xb2   : > { %v417_v44 = vld [vmem:[#allocation2 + $0x10] sm:$0xff] }
  0xb3   : > { %411 = vst.msk [vmem:[#allocation2 + $0x18] sm:$0xff] %vm320_vm0, %v406_v38  ;;  %v445_v47 = vmul.f32 %v436_v35, %v417_v44 }
  0xb4   : > { %v416_v41 = vld [vmem:[#allocation2 + $0x8] sm:$0xff] }
  0xb5   : > { %v444_v42 = vmul.f32 %v431_v39, %v416_v41 }
  0xb7   : > { %v447_v43 = vpack.c.bf16 %v444_v42, %v443_v40 }
  0xb9   : > { %690 = vmatmul.msk.bf16.vlgmr.msra.gmra.mxu1 %vm320_vm0, %v447_v43 }
  0xba   : > { %v418_v46 = vld [vmem:[#allocation2 + $0x18] sm:$0xff] }
  0xbb   : > { %v446_v48 = vmul.f32 %v441_v45, %v418_v46 }
  0xbd   : > { %v448_v49 = vpack.c.bf16 %v446_v48, %v445_v47 }
  0xbf   : > { %691 = vmatmul.msk.bf16.vlgmr.msra.gmra.mxu3 %vm320_vm0, %v448_v49 }
 0x136   : > { %v492_v52 = vpop.f32.mrf.mxu1 }
 0x137   : > { %v493_v55 = vadd.f32 %v773_v51, %v492_v52 }
 0x139   : > { %v506_v56 = vadd.f32 %v502_v53, %v493_v55 }
 0x13b   : > { %v513_v57 = vmax.f32 %v506_v56, 0.0 }
 0x13d   : > { %v517_v58 = vsel %vm512_vm2, %v513_v57, %v506_v56 }
 0x13e   : > { %v521_v59 = vmul.f32 %v517_v58, %v426_v30  ;;  %v494_v60 = vpop.f32.mrf.mxu1 }
 0x13f   : > { %v495_v62 = vadd.f32 %v773_v51, %v494_v60 }
 0x140   : > { %v525_v63 = vpack.c.bf16 %v521_v59, %v521_v59 }
 0x141   : > { %v507_v0 = vadd.f32 %v503_v61, %v495_v62 }
 0x142   : > { %530 = vst.msk [vmem:[%s294_s30] sm:$0xf] %vm529_vm3, %v525_v63  ;;  %v497_v1 = vpop.f32.mrf.mxu3 }
 0x143   : > { %v514_v3 = vmax.f32 %v507_v0, 0.0  ;;  %v498_v4 = vadd.f32 %v773_v51, %v497_v1 }
 0x145   : > { %v518_v5 = vsel %vm512_vm2, %v514_v3, %v507_v0  ;;  %v508_v6 = vadd.f32 %v504_v2, %v498_v4 }
 0x146   : > { %v522_v7 = vmul.f32 %v518_v5, %v431_v39 }
 0x147   : > { %v515_v8 = vmax.f32 %v508_v6, 0.0 }
 0x148   : > { %v526_v9 = vpack.c.bf16 %v522_v7, %v522_v7 }
 0x149   : > { %v519_v10 = vsel %vm512_vm2, %v515_v8, %v508_v6 }
 0x14a   : > { %531 = vst.msk [vmem:[%s294_s30 + $0x4] sm:$0xf] %vm529_vm3, %v526_v9  ;;  %v523_v11 = vmul.f32 %v519_v10, %v436_v35  ;;  %v499_v12 = vpop.f32.mrf.mxu3 }
 0x14b   : > { %v500_v14 = vadd.f32 %v773_v51, %v499_v12 }
 0x14c   : > { %v527_v15 = vpack.c.bf16 %v523_v11, %v523_v11 }
 0x14d   : > { %v509_v16 = vadd.f32 %v505_v13, %v500_v14 }
 0x14e   : > { %532 = vst.msk [vmem:[%s294_s30 + $0x8] sm:$0xf] %vm529_vm3, %v527_v15 }
 0x14f   : > { %v516_v17 = vmax.f32 %v509_v16, 0.0 }
 0x151   : > { %v520_v18 = vsel %vm512_vm2, %v516_v17, %v509_v16 }
 0x152   : > { %v524_v19 = vmul.f32 %v520_v18, %v441_v45 }
 0x154   : > { %v528_v20 = vpack.c.bf16 %v524_v19, %v524_v19 }
 0x156   : > { %533 = vst.msk [vmem:[%s294_s30 + $0xc] sm:$0xf] %vm529_vm3, %v528_v20 }
 0x157   : > { %801 = shalt.err (!%p798_p6)
}
 0x158   : > { %s856_s15 = smov 64   ;;  %s857_s30 = smov 4  }
 0x159   : > { %712 = dma.vmem_to_hbm [thread:$0]  (%p933_p4), %s548_s20, 256, %s550_s27, %s535_s24, %s856_s15, %s856_s15, %s857_s30  }
 0x15a PF: > { %p718_p7 = scmp.ge.s32.totalorder %s852_s26, 2  ;;  %s564_s17 = sand.u32 1, %s832_s21  }
 0x15b   : > { %s565_s18 = scalar_lea.sflag [#allocation4], %s564_s17 }
 0x15c   : > { %p715_p9 = pnand %p718_p7, %p940_p8 }
 0x15e   : > { %p716_p10 = pneg %p715_p9 }
 0x160   : > { %827 = dma.done.wait (%p716_p10), %s565_s18, 256  }
 0x161   : > { %829 = vsyncadd (%p716_p10), %s565_s18, 4294967040  ;;  %s19_s26 = sadd.s32 1, %s852_s26   ;;  %s1065_s21 = smov %s836_s22 }
 0x162   : > { %p16_p11 = scmp.ge.s32.totalorder %s19_s26, 4   ;;  %s1066_s22 = smov %s840_s23 }
 0x163   : > { %s1067_s23 = smov %s946_s10  ;;  %s1068_s24 = smov %s848_s25 }
 0x164   : > { %s1069_s25 = smov %s1071_s29  ;;  %18 = sbr.rel (!%p16_p11) target bundleno = 4 (0x4), region = 94 }
 0x169   :  { %571 = vsyncpa [#allocation4], 1 }
 0x16a   :  { %573 = vsyncpa [#allocation4 + $0x1], 1 }

</bundles_post_ra>
